<compile_context>
chip_gen: v7x
topology: tpu7x:2x2x1
jax: 0.10.0
libtpu: 0.0.40
codegen_flags: <defaults>
</compile_context>

<pallas_src>
import functools

import jax
import jax.numpy as jnp
from jax.experimental import pallas as pl
from jax.experimental.pallas import tpu as pltpu


def _round_up(x, m):
    return ((x + m - 1) // m) * m


def _cdiv(a, b):
    return -(-a // b)


def _mlp_actor_kernel(x_ref, w1_ref, b1_ref, w2_ref, b2_ref, w3_ref, b3_ref,
                      o_ref, *, act_limit):
    # Cast input to bf16 in-kernel (input is read unpadded from HBM).
    x = x_ref[...].astype(jnp.bfloat16)
    # Layer 1: Linear (bf16 MXU, f32 accumulate) + ReLU (f32 VPU)
    h = jnp.dot(x, w1_ref[...], preferred_element_type=jnp.float32) + b1_ref[...]
    h = jnp.maximum(h, 0.0)
    # Layer 2: Linear + ReLU
    h = jnp.dot(h.astype(jnp.bfloat16), w2_ref[...],
                preferred_element_type=jnp.float32) + b2_ref[...]
    h = jnp.maximum(h, 0.0)
    # Output layer: Linear + Tanh, scaled by act_limit
    h = jnp.dot(h.astype(jnp.bfloat16), w3_ref[...],
                preferred_element_type=jnp.float32) + b3_ref[...]
    o_ref[...] = (act_limit * jnp.tanh(h)).astype(o_ref.dtype)


def _choose_grid(batch, obs_dim, d1, d2, act_dim, weight_bytes,
                 cap=2048, budget_bytes=20 * 1024 * 1024):
    """Pick (tile_b, num_tiles, batch_pad).

    Largest multiple-of-8 batch tile (up to `cap`) that fits the VMEM budget,
    balanced across the grid to minimize batch padding, with >= 2 grid steps
    when batch >= 16 so both v7x TensorCores get work.
    """
    batch8 = _round_up(batch, 8)
    # Weights are double-buffered by the default pipeline -> count them twice.
    avail = max(budget_bytes - 2 * weight_bytes, 1 << 20)
    # Per-row VMEM: 2x-buffered f32 input + 2x-buffered f32 output
    # + live f32/bf16 intermediates (with slack).
    per_row = (2 * obs_dim * 4 + 2 * act_dim * 4
               + 4 * max(d1, d2) * 4 + (obs_dim + d1 + d2) * 2)
    max_rows = max(8, (avail // per_row) // 8 * 8)
    cap = max(8, min(cap, max_rows))

    num_tiles = _cdiv(batch8, cap)
    if batch8 >= 16:
        num_tiles = max(num_tiles, 2)   # feed both TCs on v7x
    tile_b = _round_up(_cdiv(batch8, num_tiles), 8)
    batch_pad = tile_b * num_tiles
    return tile_b, num_tiles, batch_pad


def prepare_params(params):
    """One-time prep: cast weights to bf16 / biases to f32 and pad hidden dims
    to multiples of 128. obs_dim (layer-1 K) and act_dim (layer-3 N) stay
    unpadded so activation HBM traffic is not inflated.

    params = (w1, b1, w2, b2, w3, b3), w_i shaped [in, out], b_i [1, out].
    """
    w1, b1, w2, b2, w3, b3 = params
    obs_dim, h1 = w1.shape
    h2 = w2.shape[1]
    act_dim = w3.shape[1]
    d1 = _round_up(h1, 128)
    d2 = _round_up(h2, 128)

    def pad2(a, rows, cols, dtype):
        a = a.astype(dtype)
        return jnp.pad(a, ((0, rows - a.shape[0]), (0, cols - a.shape[1])))

    w1p = pad2(w1, obs_dim, d1, jnp.bfloat16)
    b1p = pad2(b1, 1, d1, jnp.float32)
    w2p = pad2(w2, d1, d2, jnp.bfloat16)
    b2p = pad2(b2, 1, d2, jnp.float32)
    w3p = pad2(w3, d2, act_dim, jnp.bfloat16)
    b3p = b3.astype(jnp.float32)
    return (w1p, b1p, w2p, b2p, w3p, b3p)


def mlp_actor_forward(obs, padded_params, act_limit):
    """obs: [batch, obs_dim] f32; padded_params from prepare_params()."""
    w1p, b1p, w2p, b2p, w3p, b3p = padded_params
    batch, obs_dim = obs.shape
    d1 = w1p.shape[1]
    d2 = w2p.shape[1]
    act_dim = w3p.shape[1]

    weight_bytes = int((w1p.size + w2p.size + w3p.size) * 2
                       + (b1p.size + b2p.size + b3p.size) * 4)

    tile_b, num_tiles, batch_pad = _choose_grid(
        batch, obs_dim, d1, d2, act_dim, weight_bytes)

    # Only the batch dim gets padded (tiny); feature dims are never padded in HBM.
    obs_p = obs if batch_pad == batch else jnp.pad(
        obs, ((0, batch_pad - batch), (0, 0)))

    def resident(shape):
        # Constant block index across the batch grid -> VMEM-resident weights.
        return pl.BlockSpec(shape, lambda i: (0, 0))

    kernel = functools.partial(_mlp_actor_kernel, act_limit=float(act_limit))

    cost = pl.CostEstimate(
        flops=2 * batch * (obs_dim * d1 + d1 * d2 + d2 * act_dim),
        transcendentals=batch * act_dim,
        bytes_accessed=int(obs.size * 4 + weight_bytes + batch * act_dim * 4),
    )

    out_p = pl.pallas_call(
        kernel,
        out_shape=jax.ShapeDtypeStruct((batch_pad, act_dim), jnp.float32),
        grid=(num_tiles,),
        in_specs=[
            pl.BlockSpec((tile_b, obs_dim), lambda i: (i, 0)),
            resident(w1p.shape), resident(b1p.shape),
            resident(w2p.shape), resident(b2p.shape),
            resident(w3p.shape), resident(b3p.shape),
        ],
        out_specs=pl.BlockSpec((tile_b, act_dim), lambda i: (i, 0)),
        compiler_params=pltpu.CompilerParams(
            dimension_semantics=("parallel",),
            vmem_limit_bytes=48 * 1024 * 1024,
        ),
        cost_estimate=cost,
    )(obs_p, w1p, b1p, w2p, b2p, w3p, b3p)

    # Slice only the batch dim; feature dim is already exact.
    return out_p if batch_pad == batch else out_p[:batch]


def init_params(key, obs_dim, hidden_sizes, act_dim):
    sizes = [obs_dim] + list(hidden_sizes) + [act_dim]
    params = []
    for j in range(len(sizes) - 1):
        fan_in, fan_out = sizes[j], sizes[j + 1]
        key, wk, bk = jax.random.split(key, 3)
        bound = 1.0 / jnp.sqrt(fan_in)
        # PyTorch nn.Linear init: U(-1/sqrt(fan_in), 1/sqrt(fan_in)).
        # Stored transposed: [in, out].
        w = jax.random.uniform(wk, (fan_in, fan_out), jnp.float32, -bound, bound)
        b = jax.random.uniform(bk, (1, fan_out), jnp.float32, -bound, bound)
        params += [w, b]
    return tuple(params)


def reference_forward(obs, params, act_limit):
    # Same precision policy as the kernel: bf16 MXU operands, f32 accumulation.
    w1, b1, w2, b2, w3, b3 = params

    def lin(x, w, b):
        return jnp.dot(x.astype(jnp.bfloat16), w.astype(jnp.bfloat16),
                       preferred_element_type=jnp.float32) + b

    h = jnp.maximum(lin(obs, w1, b1), 0.0)
    h = jnp.maximum(lin(h, w2, b2), 0.0)
    return act_limit * jnp.tanh(lin(h, w3, b3))


if __name__ == "__main__":
    obs_dim, act_dim = 16, 8
    hidden_sizes = (32, 32)
    act_limit = 2.0
    batch = 2

    key = jax.random.PRNGKey(0)
    key, obs_key = jax.random.split(key)
    obs = jax.random.normal(obs_key, (batch, obs_dim), jnp.float32)
    params = init_params(key, obs_dim, hidden_sizes, act_dim)

    # One-time parameter prep (padding + bf16 cast) hoisted out of the forward.
    padded_params = prepare_params(params)

    forward = jax.jit(mlp_actor_forward, static_argnums=(2,))
    out = jax.block_until_ready(forward(obs, padded_params, act_limit))

    ref = reference_forward(obs, params, act_limit)
    assert out.shape == (batch, act_dim)
    assert jnp.allclose(out, ref, atol=1e-2, rtol=1e-2), "mismatch vs reference"

    print("KERNEL_OK")
</pallas_src>

<mosaic_0001>
module attributes {stable_mosaic.version = 11 : i64} {
  func.func @_mlp_actor_kernel(%arg0: i32, %arg1: memref<8x16xf32, #tpu.memory_space<vmem>>, %arg2: memref<16x128xbf16, #tpu.memory_space<vmem>>, %arg3: memref<1x128xf32, #tpu.memory_space<vmem>>, %arg4: memref<128x128xbf16, #tpu.memory_space<vmem>>, %arg5: memref<1x128xf32, #tpu.memory_space<vmem>>, %arg6: memref<128x8xbf16, #tpu.memory_space<vmem>>, %arg7: memref<1x8xf32, #tpu.memory_space<vmem>>, %arg8: memref<8x8xf32, #tpu.memory_space<vmem>>) attributes {dimension_semantics = [#tpu.dimension_semantics<parallel>], iteration_bounds = array<i64: 1>, scalar_prefetch = 0 : i64, scratch_operands = 0 : i64, tpu.core_type = #tpu.core_type<tc>, window_params = [{transform_indices = @transform_0, window_bounds = array<i64: 8, 16>}, {pipeline_mode = #tpu.pipeline_mode<synchronous>, transform_indices = @transform_1, window_bounds = array<i64: 16, 128>}, {pipeline_mode = #tpu.pipeline_mode<synchronous>, transform_indices = @transform_2, window_bounds = array<i64: 1, 128>}, {pipeline_mode = #tpu.pipeline_mode<synchronous>, transform_indices = @transform_3, window_bounds = array<i64: 128, 128>}, {pipeline_mode = #tpu.pipeline_mode<synchronous>, transform_indices = @transform_4, window_bounds = array<i64: 1, 128>}, {pipeline_mode = #tpu.pipeline_mode<synchronous>, transform_indices = @transform_5, window_bounds = array<i64: 128, 8>}, {pipeline_mode = #tpu.pipeline_mode<synchronous>, transform_indices = @transform_6, window_bounds = array<i64: 1, 8>}, {transform_indices = @transform_7, window_bounds = array<i64: 8, 8>}]} {
    %c0 = arith.constant 0 : index
    %c0_0 = arith.constant 0 : index
    %0 = vector.load %arg1[%c0, %c0_0] : memref<8x16xf32, #tpu.memory_space<vmem>>, vector<8x16xf32>
    %1 = arith.truncf %0 : vector<8x16xf32> to vector<8x16xbf16>
    %c0_1 = arith.constant 0 : index
    %c0_2 = arith.constant 0 : index
    %2 = vector.load %arg2[%c0_1, %c0_2] : memref<16x128xbf16, #tpu.memory_space<vmem>>, vector<16x128xbf16>
    %cst = arith.constant dense<0.000000e+00> : vector<8x128xf32>
    %3 = tpu.matmul %1, %2, %cst {dimension_numbers = #tpu.dot_dimension_numbers<[1], [0], [0], [1], [0, 0, 1, 1], [], []>} : vector<8x16xbf16>, vector<16x128xbf16>, vector<8x128xf32> -> vector<8x128xf32>
    %c0_3 = arith.constant 0 : index
    %c0_4 = arith.constant 0 : index
    %4 = vector.load %arg3[%c0_3, %c0_4] : memref<1x128xf32, #tpu.memory_space<vmem>>, vector<1x128xf32>
    %5 = vector.broadcast %4 : vector<1x128xf32> to vector<8x128xf32>
    %6 = arith.addf %3, %5 : vector<8x128xf32>
    %cst_5 = arith.constant 0.000000e+00 : f32
    %7 = vector.broadcast %cst_5 : f32 to vector<8x128xf32>
    %8 = arith.maximumf %6, %7 : vector<8x128xf32>
    %9 = arith.truncf %8 : vector<8x128xf32> to vector<8x128xbf16>
    %c0_6 = arith.constant 0 : index
    %c0_7 = arith.constant 0 : index
    %10 = vector.load %arg4[%c0_6, %c0_7] : memref<128x128xbf16, #tpu.memory_space<vmem>>, vector<128x128xbf16>
    %cst_8 = arith.constant dense<0.000000e+00> : vector<8x128xf32>
    %11 = tpu.matmul %9, %10, %cst_8 {dimension_numbers = #tpu.dot_dimension_numbers<[1], [0], [0], [1], [0, 0, 1, 1], [], []>} : vector<8x128xbf16>, vector<128x128xbf16>, vector<8x128xf32> -> vector<8x128xf32>
    %c0_9 = arith.constant 0 : index
    %c0_10 = arith.constant 0 : index
    %12 = vector.load %arg5[%c0_9, %c0_10] : memref<1x128xf32, #tpu.memory_space<vmem>>, vector<1x128xf32>
    %13 = vector.broadcast %12 : vector<1x128xf32> to vector<8x128xf32>
    %14 = arith.addf %11, %13 : vector<8x128xf32>
    %cst_11 = arith.constant 0.000000e+00 : f32
    %15 = vector.broadcast %cst_11 : f32 to vector<8x128xf32>
    %16 = arith.maximumf %14, %15 : vector<8x128xf32>
    %17 = arith.truncf %16 : vector<8x128xf32> to vector<8x128xbf16>
    %c0_12 = arith.constant 0 : index
    %c0_13 = arith.constant 0 : index
    %18 = vector.load %arg6[%c0_12, %c0_13] : memref<128x8xbf16, #tpu.memory_space<vmem>>, vector<128x8xbf16>
    %cst_14 = arith.constant dense<0.000000e+00> : vector<8x8xf32>
    %19 = tpu.matmul %17, %18, %cst_14 {dimension_numbers = #tpu.dot_dimension_numbers<[1], [0], [0], [1], [0, 0, 1, 1], [], []>} : vector<8x128xbf16>, vector<128x8xbf16>, vector<8x8xf32> -> vector<8x8xf32>
    %c0_15 = arith.constant 0 : index
    %c0_16 = arith.constant 0 : index
    %20 = vector.load %arg7[%c0_15, %c0_16] : memref<1x8xf32, #tpu.memory_space<vmem>>, vector<1x8xf32>
    %21 = vector.broadcast %20 : vector<1x8xf32> to vector<8x8xf32>
    %22 = arith.addf %19, %21 : vector<8x8xf32>
    %23 = math.tanh %22 : vector<8x8xf32>
    %cst_17 = arith.constant 2.000000e+00 : f32
    %24 = vector.broadcast %cst_17 : f32 to vector<8x8xf32>
    %25 = arith.mulf %24, %23 : vector<8x8xf32>
    %c0_18 = arith.constant 0 : index
    %c0_19 = arith.constant 0 : index
    %26 = vector.load %arg8[%c0_18, %c0_19] : memref<8x8xf32, #tpu.memory_space<vmem>>, vector<8x8xf32>
    tpu.vector_store %arg8[%c0_18, %c0_19], %25 {strides = array<i32>} : memref<8x8xf32, #tpu.memory_space<vmem>>, vector<8x8xf32>,
    return
  }
  func.func @transform_0(%arg0: i32) -> (i32, i32) {
    %c0_i32 = arith.constant 0 : i32
    %c0_i32_0 = arith.constant 0 : i32
    return %arg0, %c0_i32 : i32, i32
  }
  func.func @transform_1(%arg0: i32) -> (i32, i32) {
    %c0_i32 = arith.constant 0 : i32
    %c0_i32_0 = arith.constant 0 : i32
    %c0_i32_1 = arith.constant 0 : i32
    return %c0_i32, %c0_i32_0 : i32, i32
  }
  func.func @transform_2(%arg0: i32) -> (i32, i32) {
    %c0_i32 = arith.constant 0 : i32
    %c0_i32_0 = arith.constant 0 : i32
    %c0_i32_1 = arith.constant 0 : i32
    return %c0_i32, %c0_i32_0 : i32, i32
  }
  func.func @transform_3(%arg0: i32) -> (i32, i32) {
    %c0_i32 = arith.constant 0 : i32
    %c0_i32_0 = arith.constant 0 : i32
    %c0_i32_1 = arith.constant 0 : i32
    return %c0_i32, %c0_i32_0 : i32, i32
  }
  func.func @transform_4(%arg0: i32) -> (i32, i32) {
    %c0_i32 = arith.constant 0 : i32
    %c0_i32_0 = arith.constant 0 : i32
    %c0_i32_1 = arith.constant 0 : i32
    return %c0_i32, %c0_i32_0 : i32, i32
  }
  func.func @transform_5(%arg0: i32) -> (i32, i32) {
    %c0_i32 = arith.constant 0 : i32
    %c0_i32_0 = arith.constant 0 : i32
    %c0_i32_1 = arith.constant 0 : i32
    return %c0_i32, %c0_i32_0 : i32, i32
  }
  func.func @transform_6(%arg0: i32) -> (i32, i32) {
    %c0_i32 = arith.constant 0 : i32
    %c0_i32_0 = arith.constant 0 : i32
    %c0_i32_1 = arith.constant 0 : i32
    return %c0_i32, %c0_i32_0 : i32, i32
  }
  func.func @transform_7(%arg0: i32) -> (i32, i32) {
    %c0_i32 = arith.constant 0 : i32
    %c0_i32_0 = arith.constant 0 : i32
    return %arg0, %c0_i32 : i32, i32
  }
}

</mosaic_0001>

<bundles_post_ra>
// kernel: mlp_actor_forward.1
= control target key start
LH: loop header
LB: loop body
LE: loop exit
PB: predicated region body
PF: predicated region fallthrough
CT: control target
= control target key end

     0   :  { %v430_v0 = vmov 0.0   ;;  %vm431_vm0 = vmmov 0   ;;  %vm44_vm1 = vcmask 130048   ;;  %vm316_vm2 = vcmask 64512   ;;  %s558_s1 = inlined_call_operand.vmem [shape: bf16[16,128], index: 1, kind: input, shape index: {}]   ;;  %s559_s0 = inlined_call_operand.vmem [shape: f32[8,16], index: 0, kind: input, shape index: {}]   ;;  %s560_s3 = inlined_call_operand.vmem [shape: bf16[128,128], index: 3, kind: input, shape index: {}]   ;;  %s561_s5 = inlined_call_operand.vmem [shape: bf16[128,8], index: 5, kind: input, shape index: {}]   ;;  %s562_s2 = inlined_call_operand.vmem [shape: f32[1,128], index: 2, kind: input, shape index: {}]   ;;  %s563_s4 = inlined_call_operand.vmem [shape: f32[1,128], index: 4, kind: input, shape index: {}]   ;;  %s564_s6 = inlined_call_operand.vmem [shape: f32[1,8], index: 6, kind: input, shape index: {}]   ;;  %s565_s7 = inlined_call_operand.vmem [shape: f32[8,8], index: 7, kind: output, shape index: {}]  }
   0x1   :  { %363 = vmatprep.subr.bf16.mxu0 %v430_v0  ;;  %v411_v1 = vld [vmem:[%s558_s1] sm:$0xff]   ;;  %365 = vmatprep.mubr.msk.bf16.mxu0 %vm431_vm0, %v430_v0  ;;  %v413_v5 = vld [vmem:[%s560_s3 + $0x8] sm:$0xff]   ;;  %v414_v6 = vld [vmem:[%s560_s3 + $0x10] sm:$0xff]  }
   0x2   :  { %v27_v2 = vld [vmem:[%s559_s0] sm:$0xff]  ;;  %369 = vmatprep.subr.bf16.mxu1 %v430_v0  ;;  %385 = vmatprep.mubr.msk.bf16.mxu1 %vm431_vm0, %v430_v0  ;;  %v415_v7 = vld [vmem:[%s560_s3 + $0x18] sm:$0xff]   ;;  %v417_v9 = vld [vmem:[%s560_s3 + $0x28] sm:$0xff]  }
   0x3   :  { %364 = vmatpush3.bf16.msra.mxu0 %v411_v1  ;;  %v28_v3 = vpack.c.bf16 %v27_v2, %v27_v2  ;;  %v412_v4 = vld [vmem:[%s560_s3] sm:$0xff]   ;;  %v418_v10 = vld [vmem:[%s560_s3 + $0x30] sm:$0xff]   ;;  %v419_v11 = vld [vmem:[%s560_s3 + $0x38] sm:$0xff]  }
   0x4   :  { %389 = vmatprep.subr.bf16.mxu0 %v430_v0  ;;  %370 = vmatpush3.bf16.msra.mxu1 %v412_v4  ;;  %v416_v8 = vld [vmem:[%s560_s3 + $0x20] sm:$0xff]   ;;  %v421_v13 = vld [vmem:[%s561_s5 + $0x8] sm:$0xff]   ;;  %v422_v14 = vld [vmem:[%s561_s5 + $0x10] sm:$0xff]  }
   0x5   :  { %371 = vmatprep.subr.bf16.mxu1 %v430_v0  ;;  %v420_v12 = vld [vmem:[%s561_s5] sm:$0xff]   ;;  %v423_v15 = vld [vmem:[%s561_s5 + $0x18] sm:$0xff]   ;;  %v425_v17 = vld [vmem:[%s561_s5 + $0x28] sm:$0xff]  }
   0x6   :  { %366 = vmatmul.mubr.msk.bf16.vlgmr.msra.gmra.mrb[0].mxu0 %vm44_vm1, %v28_v3  ;;  %v424_v16 = vld [vmem:[%s561_s5 + $0x20] sm:$0xff]   ;;  %v426_v26 = vld [vmem:[%s561_s5 + $0x30] sm:$0xff]   ;;  %v427_v27 = vld [vmem:[%s561_s5 + $0x38] sm:$0xff]  }
   0x7   :  { %405 = vmatprep.mubr.msk.bf16.mxu0 %vm431_vm0, %v430_v0  ;;  %390 = vmatpush3.bf16.msra.mxu0 %v420_v12  ;;  %v322_v18 = vld [vmem:[%s562_s2] ss:$0 sm:$0xff] }
   0x8   :  { %372 = vmatpush3.bf16.msra.mxu1 %v413_v5  ;;  %391 = vmatprep.subr.bf16.mxu0 %v430_v0  ;;  %v325_v28 = vld [vmem:[%s563_s4] ss:$0 sm:$0xff] }
   0x9   :  { %373 = vmatprep.subr.bf16.mxu1 %v430_v0  ;;  %v334_v36 = vld [vmem:[%s564_s6] ss:$0 sm:$0xff] }
   0xb   :  { %392 = vmatpush3.bf16.msra.mxu0 %v421_v13 }
   0xc   :  { %374 = vmatpush3.bf16.msra.mxu1 %v414_v6  ;;  %393 = vmatprep.subr.bf16.mxu0 %v430_v0 }
   0xd   :  { %375 = vmatprep.subr.bf16.mxu1 %v430_v0 }
   0xf   :  { %394 = vmatpush3.bf16.msra.mxu0 %v422_v14 }
  0x10   :  { %376 = vmatpush3.bf16.msra.mxu1 %v415_v7  ;;  %395 = vmatprep.subr.bf16.mxu0 %v430_v0 }
  0x11   :  { %377 = vmatprep.subr.bf16.mxu1 %v430_v0 }
  0x13   :  { %396 = vmatpush3.bf16.msra.mxu0 %v423_v15 }
  0x14   :  { %378 = vmatpush3.bf16.msra.mxu1 %v416_v8  ;;  %397 = vmatprep.subr.bf16.mxu0 %v430_v0 }
  0x15   :  { %379 = vmatprep.subr.bf16.mxu1 %v430_v0 }
  0x17   :  { %398 = vmatpush3.bf16.msra.mxu0 %v424_v16 }
  0x18   :  { %380 = vmatpush3.bf16.msra.mxu1 %v417_v9  ;;  %399 = vmatprep.subr.bf16.mxu0 %v430_v0 }
  0x19   :  { %381 = vmatprep.subr.bf16.mxu1 %v430_v0 }
  0x1b   :  { %400 = vmatpush3.bf16.msra.mxu0 %v425_v17 }
  0x1c   :  { %382 = vmatpush3.bf16.msra.mxu1 %v418_v10  ;;  %401 = vmatprep.subr.bf16.mxu0 %v430_v0 }
  0x1d   :  { %383 = vmatprep.subr.bf16.mxu1 %v430_v0 }
  0x1f   :  { %402 = vmatpush3.bf16.msra.mxu0 %v426_v26 }
  0x20   :  { %384 = vmatpush3.bf16.msra.mxu1 %v419_v11  ;;  %403 = vmatprep.subr.bf16.mxu0 %v430_v0 }
  0x23   :  { %404 = vmatpush3.bf16.msra.mxu0 %v427_v27 }
  0xd9   :  { %v82_v19 = vpop.f32.mrb[0].mxu0 }
  0xda   :  { %v83_v20 = vadd.f32 %v322_v18, %v82_v19  ;;  %v367_v21 = vpop.f32.mrb[1].mxu0 }
  0xdb   :  { %v85_v22 = vpop.f32.mrb[2].mxu0 }
  0xdc   :  { %v88_v23 = vmax.f32 %v83_v20, 0.0  ;;  %v368_v24 = vpop.f32.mrb[3].mxu0 }
  0xde   :  { %v89_v25 = vpack.c.bf16 %v88_v23, %v88_v23 }
  0xe0   :  { %386 = vmatmul.mubr.bf16.vlgmr.msra.gmra.mrb[0].mxu1 %v89_v25 }
 0x1b3   :  { %v195_v29 = vpop.f32.mrb[0].mxu1 }
 0x1b4   :  { %v196_v30 = vadd.f32 %v325_v28, %v195_v29  ;;  %v387_v31 = vpop.f32.mrb[1].mxu1 }
 0x1b5   :  { %v198_v32 = vpop.f32.mrb[2].mxu1 }
 0x1b6   :  { %v201_v33 = vmax.f32 %v196_v30, 0.0  ;;  %v388_v34 = vpop.f32.mrb[3].mxu1 }
 0x1b8   :  { %v202_v35 = vpack.c.bf16 %v201_v33, %v201_v33 }
 0x1ba   :  { %406 = vmatmul.mubr.bf16.vlgmr.msra.gmra.mrb[4].mxu0 %v202_v35 }
 0x28d   :  { %v308_v37 = vpop.f32.mrb[4].mxu0 }
 0x28e   :  { %v309_v38 = vadd.f32 %v334_v36, %v308_v37  ;;  %v407_v39 = vpop.f32.mrb[5].mxu0 }
 0x28f   :  { %v311_v40 = vpop.f32.mrb[6].mxu0 }
 0x290   :  { %428 = vtanh.f32 %v309_v38  ;;  %v408_v41 = vpop.f32.mrb[7].mxu0 }
 0x29a   :  { %v429_v42 = vpop.eup %428 }
 0x29b   :  { %v315_v43 = vmul.f32 2.0, %v429_v42 }
 0x29d   :  { %317 = vst.msk [vmem:[%s565_s7] sm:$0xff] %vm316_vm2, %v315_v43 }

</bundles_post_ra>
